<compile_context>
chip_gen: v6e
topology: v6e:2x2x1
jax: 0.10.0
libtpu: 0.0.40
codegen_flags: <defaults>
</compile_context>

<pallas_src>
import functools

import jax
import jax.numpy as jnp
from jax.experimental import pallas as pl
from jax.experimental.pallas import tpu as pltpu


def _im2col_3x3(x_nhwc):
    """[B,H,W,C] -> [B, H*W, 9*C] patches for a 3x3 / stride-1 / pad-1 conv."""
    B, H, W, C = x_nhwc.shape
    xp = jnp.pad(x_nhwc, ((0, 0), (1, 1), (1, 1), (0, 0)))
    cols = []
    for dh in range(3):
        for dw in range(3):
            cols.append(xp[:, dh:dh + H, dw:dw + W, :])       # [B,H,W,C]
    patches = jnp.stack(cols, axis=-2)                         # [B,H,W,9,C]
    return patches.reshape(B, H * W, 9 * C)


def _mutualnet_kernel(hw, patch_ref, wc_ref, bc_ref, wf_ref, bf_ref,
                      o_ref, acc_ref):
    # Grid: (batch b  [parallel], spatial tile p  [arbitrary/reduction]).
    # patch_ref: [tHW, 9*Cin]      bf16   (this batch element's spatial tile)
    # wc_ref   : [9*Cin, NB*Chid]  bf16   (all branches' conv weights, fused)
    # bc_ref   : [1, NB*Chid]      f32
    # wf_ref   : [NB*Chid, NB*NCpad] f32  (block-diagonal per-branch fc)
    # bf_ref   : [1, NB*NCpad]     f32
    # o_ref    : [1, NB*NCpad]     f32    (this batch element's padded logits)
    # acc_ref  : [1, NB*Chid]      f32    (GAP partial-sum accumulator)
    p = pl.program_id(1)

    @pl.when(p == 0)
    def _init():
        acc_ref[...] = jnp.zeros_like(acc_ref)

    # Conv-as-matmul for every branch at once, bf16 in / f32 accumulate.
    h = jnp.dot(patch_ref[...], wc_ref[...],
                preferred_element_type=jnp.float32)            # [tHW, NB*Chid]
    h = jnp.maximum(h + bc_ref[...], 0.0)                      # bias + ReLU
    acc_ref[...] += jnp.sum(h, axis=0, keepdims=True)          # GAP partial sum

    @pl.when(p == pl.num_programs(1) - 1)
    def _finalize():
        g = acc_ref[...] * (1.0 / hw)                          # [1, NB*Chid]
        logits = jnp.dot(g, wf_ref[...],
                         preferred_element_type=jnp.float32) + bf_ref[...]
        o_ref[...] = logits.astype(o_ref.dtype)


def mutualnet_forward(x_nchw, params, tile_hw=None):
    """Pallas forward: x [B, Cin, H, W] -> [B, num_classes, num_branches]."""
    conv_w, conv_b, fc_w, fc_b = params          # stacked per-branch params
    NB, K9C, Chid = conv_w.shape
    NC = fc_w.shape[-1]
    B, Cin, H, W = x_nchw.shape
    HW = H * W
    assert K9C == 9 * Cin

    NCPAD = ((NC + 127) // 128) * 128            # lane-dense per-branch logits
    NHID = NB * Chid
    NOUT = NB * NCPAD

    # Spatial tile: largest power-of-two tile <= 512 that divides H*W.
    if tile_hw is None:
        tile_hw = HW
        for cand in (512, 256, 128, 64, 32, 16, 8):
            if HW % cand == 0:
                tile_hw = cand
                break
    assert HW % tile_hw == 0
    n_p = HW // tile_hw

    # ---- host-side layout plumbing (XLA glue) -------------------------------
    x_nhwc = jnp.transpose(x_nchw, (0, 2, 3, 1)).astype(jnp.float32)
    patches = _im2col_3x3(x_nhwc).astype(jnp.bfloat16)         # [B, HW, 9*Cin]

    # Fused conv weights/bias: [9*Cin, NB*Chid], [1, NB*Chid].
    wc_all = jnp.transpose(conv_w, (1, 0, 2)).reshape(K9C, NHID)
    wc_all = wc_all.astype(jnp.bfloat16)
    bc_all = conv_b.reshape(1, NHID).astype(jnp.float32)

    # Block-diagonal fc with lane padding: [NB*Chid, NB*NCpad], [1, NB*NCpad].
    wf_bd = jnp.zeros((NHID, NOUT), jnp.float32)
    bf_all = jnp.zeros((1, NOUT), jnp.float32)
    for i in range(NB):
        wf_bd = wf_bd.at[i * Chid:(i + 1) * Chid,
                         i * NCPAD:i * NCPAD + NC].set(fc_w[i])
        bf_all = bf_all.at[0, i * NCPAD:i * NCPAD + NC].set(fc_b[i, 0])

    # ---- Pallas call --------------------------------------------------------
    grid_spec = pltpu.PrefetchScalarGridSpec(
        num_scalar_prefetch=0,
        grid=(B, n_p),
        in_specs=[
            # patches: per-batch, per-spatial-tile
            pl.BlockSpec((None, tile_hw, K9C), lambda b, p: (b, p, 0)),
            # fused conv weights / bias (shared, constant block index)
            pl.BlockSpec((K9C, NHID), lambda b, p: (0, 0)),
            pl.BlockSpec((1, NHID), lambda b, p: (0, 0)),
            # block-diagonal fc weights / bias (shared)
            pl.BlockSpec((NHID, NOUT), lambda b, p: (0, 0)),
            pl.BlockSpec((1, NOUT), lambda b, p: (0, 0)),
        ],
        out_specs=pl.BlockSpec((None, 1, NOUT), lambda b, p: (b, 0, 0)),
        scratch_shapes=[pltpu.VMEM((1, NHID), jnp.float32)],
    )

    out_padded = pl.pallas_call(
        functools.partial(_mutualnet_kernel, float(HW)),
        out_shape=jax.ShapeDtypeStruct((B, 1, NOUT), jnp.float32),
        grid_spec=grid_spec,
        compiler_params=pltpu.CompilerParams(
            dimension_semantics=("parallel", "arbitrary")),
    )(patches, wc_all, bc_all, wf_bd, bf_all)                  # [B, 1, NB*NCpad]

    # Strip lane padding, match torch output layout [B, NC, NB].
    out = out_padded.reshape(B, NB, NCPAD)[:, :, :NC]          # [B, NB, NC]
    return jnp.transpose(out, (0, 2, 1))                       # [B, NC, NB]


def init_params(key, num_branches, c_in, c_hid, num_classes):
    ks = jax.random.split(key, 4)
    conv_w = 0.05 * jax.random.normal(
        ks[0], (num_branches, 3 * 3 * c_in, c_hid), dtype=jnp.float32)
    conv_b = 0.01 * jax.random.normal(
        ks[1], (num_branches, 1, c_hid), dtype=jnp.float32)
    fc_w = 0.05 * jax.random.normal(
        ks[2], (num_branches, c_hid, num_classes), dtype=jnp.float32)
    fc_b = 0.01 * jax.random.normal(
        ks[3], (num_branches, 1, num_classes), dtype=jnp.float32)
    return conv_w, conv_b, fc_w, fc_b


def _reference_forward(x_nchw, params):
    """Pure-JAX reference of the same synthetic students (bf16 conv inputs,
    f32 accumulation, matching the kernel's quantization)."""
    conv_w, conv_b, fc_w, fc_b = params
    NB = conv_w.shape[0]
    B, Cin, H, W = x_nchw.shape
    x_nhwc = jnp.transpose(x_nchw, (0, 2, 3, 1)).astype(jnp.float32)
    patches = _im2col_3x3(x_nhwc).reshape(B * H * W, 9 * Cin)
    patches_bf = patches.astype(jnp.bfloat16)
    outs = []
    for i in range(NB):
        h = jnp.dot(patches_bf, conv_w[i].astype(jnp.bfloat16),
                    preferred_element_type=jnp.float32)        # [B*H*W, Chid]
        h = jnp.maximum(h + conv_b[i], 0.0)
        g = h.reshape(B, H * W, -1).mean(axis=1)               # GAP -> [B, Chid]
        outs.append(g @ fc_w[i] + fc_b[i])                     # [B, NC]
    return jnp.stack(outs, axis=-1)                            # [B, NC, NB]


if __name__ == "__main__":
    # Small shapes consistent with the module's forward semantics.
    B, Cin, H, W = 2, 4, 16, 16
    num_branches, num_classes, c_hid = 4, 10, 32

    key = jax.random.PRNGKey(0)
    k_x, k_p = jax.random.split(key)
    x = jax.random.normal(k_x, (B, Cin, H, W), dtype=jnp.float32)
    params = init_params(k_p, num_branches, Cin, c_hid, num_classes)

    # tile_hw=128 forces a 2-step spatial reduction so the accumulate/finalize
    # path is exercised even at this toy size.
    out = mutualnet_forward(x, params, tile_hw=128)
    out = jax.block_until_ready(out)

    assert out.shape == (B, num_classes, num_branches), out.shape

    ref = jax.block_until_ready(_reference_forward(x, params))
    max_err = float(jnp.max(jnp.abs(out - ref)))
    assert jnp.allclose(out, ref, atol=2e-3, rtol=2e-3), f"mismatch {max_err}"

    print("KERNEL_OK")
</pallas_src>

<mosaic_0001>
module attributes {stable_mosaic.version = 11 : i64} {
  func.func @_mutualnet_kernel(%arg0: i32, %arg1: i32, %arg2: memref<1x128x36xbf16, #tpu.memory_space<vmem>>, %arg3: memref<36x128xbf16, #tpu.memory_space<vmem>>, %arg4: memref<1x128xf32, #tpu.memory_space<vmem>>, %arg5: memref<128x512xf32, #tpu.memory_space<vmem>>, %arg6: memref<1x512xf32, #tpu.memory_space<vmem>>, %arg7: memref<1x1x512xf32, #tpu.memory_space<vmem>>, %arg8: memref<1x128xf32, #tpu.memory_space<vmem>>) attributes {dimension_semantics = [#tpu.dimension_semantics<parallel>, #tpu.dimension_semantics<arbitrary>], iteration_bounds = array<i64: 2, 2>, scalar_prefetch = 0 : i64, scratch_operands = 1 : i64, tpu.core_type = #tpu.core_type<tc>, window_params = [{transform_indices = @transform_0, window_bounds = array<i64: 1, 128, 36>}, {pipeline_mode = #tpu.pipeline_mode<synchronous>, transform_indices = @transform_1, window_bounds = array<i64: 36, 128>}, {pipeline_mode = #tpu.pipeline_mode<synchronous>, transform_indices = @transform_2, window_bounds = array<i64: 1, 128>}, {pipeline_mode = #tpu.pipeline_mode<synchronous>, transform_indices = @transform_3, window_bounds = array<i64: 128, 512>}, {pipeline_mode = #tpu.pipeline_mode<synchronous>, transform_indices = @transform_4, window_bounds = array<i64: 1, 512>}, {transform_indices = @transform_5, window_bounds = array<i64: 1, 1, 512>}]} {
    %c0_i32 = arith.constant 0 : i32
    %0 = arith.cmpi eq, %arg1, %c0_i32 : i32
    %1 = arith.extui %0 : i1 to i32
    %c0_i32_0 = arith.constant 0 : i32
    %2 = arith.cmpi ne, %1, %c0_i32_0 : i32
    scf.if %2 {
      %cst_14 = arith.constant 0.000000e+00 : f32
      %20 = vector.broadcast %cst_14 : f32 to vector<1x128xf32>
      %c0_15 = arith.constant 0 : index
      %c0_16 = arith.constant 0 : index
      %21 = vector.load %arg8[%c0_15, %c0_16] : memref<1x128xf32, #tpu.memory_space<vmem>>, vector<1x128xf32>
      tpu.vector_store %arg8[%c0_15, %c0_16], %20 {strides = array<i32>} : memref<1x128xf32, #tpu.memory_space<vmem>>, vector<1x128xf32>,
    } else {
    }
    %c0 = arith.constant 0 : index
    %c0_1 = arith.constant 0 : index
    %c0_2 = arith.constant 0 : index
    %3 = vector.load %arg2[%c0, %c0_1, %c0_2] : memref<1x128x36xbf16, #tpu.memory_space<vmem>>, vector<1x128x36xbf16>
    %4 = vector.shape_cast %3 : vector<1x128x36xbf16> to vector<128x36xbf16>
    %c0_3 = arith.constant 0 : index
    %c0_4 = arith.constant 0 : index
    %5 = vector.load %arg3[%c0_3, %c0_4] : memref<36x128xbf16, #tpu.memory_space<vmem>>, vector<36x128xbf16>
    %cst = arith.constant dense<0.000000e+00> : vector<128x128xf32>
    %6 = tpu.matmul %4, %5, %cst {dimension_numbers = #tpu.dot_dimension_numbers<[1], [0], [0], [1], [0, 0, 1, 1], [], []>} : vector<128x36xbf16>, vector<36x128xbf16>, vector<128x128xf32> -> vector<128x128xf32>
    %c0_5 = arith.constant 0 : index
    %c0_6 = arith.constant 0 : index
    %7 = vector.load %arg4[%c0_5, %c0_6] : memref<1x128xf32, #tpu.memory_space<vmem>>, vector<1x128xf32>
    %8 = vector.broadcast %7 : vector<1x128xf32> to vector<128x128xf32>
    %9 = arith.addf %6, %8 : vector<128x128xf32>
    %cst_7 = arith.constant 0.000000e+00 : f32
    %10 = vector.broadcast %cst_7 : f32 to vector<128x128xf32>
    %11 = arith.maximumf %9, %10 : vector<128x128xf32>
    %c0_8 = arith.constant 0 : index
    %c0_9 = arith.constant 0 : index
    %12 = vector.load %arg8[%c0_8, %c0_9] : memref<1x128xf32, #tpu.memory_space<vmem>>, vector<1x128xf32>
    %cst_10 = arith.constant dense<0.000000e+00> : vector<128xf32>
    %13 = vector.multi_reduction <add>, %11, %cst_10 [0] : vector<128x128xf32> to vector<128xf32>
    %14 = vector.shape_cast %13 : vector<128xf32> to vector<1x128xf32>
    %15 = arith.addf %12, %14 : vector<1x128xf32>
    %c0_11 = arith.constant 0 : index
    %c0_12 = arith.constant 0 : index
    %16 = vector.load %arg8[%c0_11, %c0_12] : memref<1x128xf32, #tpu.memory_space<vmem>>, vector<1x128xf32>
    tpu.vector_store %arg8[%c0_11, %c0_12], %15 {strides = array<i32>} : memref<1x128xf32, #tpu.memory_space<vmem>>, vector<1x128xf32>,
    %c1_i32 = arith.constant 1 : i32
    %17 = arith.cmpi eq, %arg1, %c1_i32 : i32
    %18 = arith.extui %17 : i1 to i32
    %c0_i32_13 = arith.constant 0 : i32
    %19 = arith.cmpi ne, %18, %c0_i32_13 : i32
    scf.if %19 {
      %c0_14 = arith.constant 0 : index
      %c0_15 = arith.constant 0 : index
      %20 = vector.load %arg8[%c0_14, %c0_15] : memref<1x128xf32, #tpu.memory_space<vmem>>, vector<1x128xf32>
      %cst_16 = arith.constant 3.906250e-03 : f32
      %21 = vector.broadcast %cst_16 : f32 to vector<1x128xf32>
      %22 = arith.mulf %20, %21 : vector<1x128xf32>
      %c0_17 = arith.constant 0 : index
      %c0_18 = arith.constant 0 : index
      %23 = vector.load %arg5[%c0_17, %c0_18] : memref<128x512xf32, #tpu.memory_space<vmem>>, vector<128x512xf32>
      %cst_19 = arith.constant dense<0.000000e+00> : vector<1x512xf32>
      %24 = tpu.matmul %22, %23, %cst_19 {dimension_numbers = #tpu.dot_dimension_numbers<[1], [0], [0], [1], [0, 0, 1, 1], [], []>} : vector<1x128xf32>, vector<128x512xf32>, vector<1x512xf32> -> vector<1x512xf32>
      %c0_20 = arith.constant 0 : index
      %c0_21 = arith.constant 0 : index
      %25 = vector.load %arg6[%c0_20, %c0_21] : memref<1x512xf32, #tpu.memory_space<vmem>>, vector<1x512xf32>
      %26 = arith.addf %24, %25 : vector<1x512xf32>
      %c0_22 = arith.constant 0 : index
      %c0_23 = arith.constant 0 : index
      %c0_24 = arith.constant 0 : index
      %27 = vector.load %arg7[%c0_22, %c0_23, %c0_24] : memref<1x1x512xf32, #tpu.memory_space<vmem>>, vector<1x1x512xf32>
      %28 = vector.shape_cast %27 : vector<1x1x512xf32> to vector<1x512xf32>
      %29 = vector.shape_cast %26 : vector<1x512xf32> to vector<1x1x512xf32>
      tpu.vector_store %arg7[%c0_22, %c0_23, %c0_24], %29 {strides = array<i32>} : memref<1x1x512xf32, #tpu.memory_space<vmem>>, vector<1x1x512xf32>,
    } else {
    }
    return
  }
  func.func @transform_0(%arg0: i32, %arg1: i32) -> (i32, i32, i32) {
    %c0_i32 = arith.constant 0 : i32
    %c0_i32_0 = arith.constant 0 : i32
    return %arg0, %arg1, %c0_i32 : i32, i32, i32
  }
  func.func @transform_1(%arg0: i32, %arg1: i32) -> (i32, i32) {
    %c0_i32 = arith.constant 0 : i32
    %c0_i32_0 = arith.constant 0 : i32
    %c0_i32_1 = arith.constant 0 : i32
    return %c0_i32, %c0_i32_0 : i32, i32
  }
  func.func @transform_2(%arg0: i32, %arg1: i32) -> (i32, i32) {
    %c0_i32 = arith.constant 0 : i32
    %c0_i32_0 = arith.constant 0 : i32
    %c0_i32_1 = arith.constant 0 : i32
    return %c0_i32, %c0_i32_0 : i32, i32
  }
  func.func @transform_3(%arg0: i32, %arg1: i32) -> (i32, i32) {
    %c0_i32 = arith.constant 0 : i32
    %c0_i32_0 = arith.constant 0 : i32
    %c0_i32_1 = arith.constant 0 : i32
    return %c0_i32, %c0_i32_0 : i32, i32
  }
  func.func @transform_4(%arg0: i32, %arg1: i32) -> (i32, i32) {
    %c0_i32 = arith.constant 0 : i32
    %c0_i32_0 = arith.constant 0 : i32
    %c0_i32_1 = arith.constant 0 : i32
    return %c0_i32, %c0_i32_0 : i32, i32
  }
  func.func @transform_5(%arg0: i32, %arg1: i32) -> (i32, i32, i32) {
    %c0_i32 = arith.constant 0 : i32
    %c0_i32_0 = arith.constant 0 : i32
    %c0_i32_1 = arith.constant 0 : i32
    return %arg0, %c0_i32, %c0_i32_0 : i32, i32, i32
  }
}

</mosaic_0001>

<bundles_post_ra>
// kernel: tpu_custom_call.1
= control target key start
LH: loop header
LB: loop body
LE: loop exit
PB: predicated region body
PF: predicated region fallthrough
CT: control target
= control target key end

     0   :  { %10 = vsyncpa [#allocation4], 0  ;;  %s1426_s0 = inlined_call_operand.vmem [shape: bf16[2,256,36], index: 0, kind: input, shape index: {}]   ;;  %s1427_s1 = inlined_call_operand.vmem [shape: bf16[36,128], index: 1, kind: input, shape index: {}]   ;;  %s1428_s2 = inlined_call_operand.vmem [shape: f32[1,128], index: 2, kind: input, shape index: {}]   ;;  %s1429_s3 = inlined_call_operand.hbm [shape: f32[128,512], index: 3, kind: input, shape index: {}]   ;;  %s1430_s4 = inlined_call_operand.vmem [shape: f32[1,512], index: 4, kind: input, shape index: {}]   ;;  %s1431_s5 = inlined_call_operand.hbm [shape: f32[2,1,512], index: 5, kind: output, shape index: {}]  }
   0x1   :  { %11 = vsyncpa [#allocation5], 0 }
   0x2   :  { %13 = vsyncpa [#allocation5 + $0x1], 0  ;;  %s1231_s18 = smov 0   ;;  %s1233_s19 = smov 0  }
   0x3   :  { %s1235_s20 = smov 0   ;;  %s1237_s21 = smov 0  }
   0x4   :  { %s1239_s22 = smov 0   ;;  %s1241_s23 = smov 0  }
   0x5   :  { %s1243_s24 = smov 0   ;;  %s1245_s25 = smov 0  }
   0x6 LB: > { %s892_s26 = sadd.s32 4294967295, %s1192_s25   ;;  %s893_s27 = sadd.s32 4294967294, %s1192_s25   ;;  %s1192_s25 = sphi %s1245_s25, %s19_s25   ;;  %s1188_s24 = sphi %s1243_s24, %s1445_s24   ;;  %s1184_s23 = sphi %s1241_s23, %s1444_s23   ;;  %s1180_s22 = sphi %s1239_s22, %s1443_s22   ;;  %s1176_s21 = sphi %s1237_s21, %s1442_s21   ;;  %s1172_s20 = sphi %s1235_s20, %s1441_s20   ;;  %s1168_s19 = sphi %s1233_s19, %s1440_s19   ;;  %s1164_s18 = sphi %s1231_s18, %s1439_s18  }
   0x7   : > { %s28_s28 = sadd.s32 1, %s1184_s23  ;;  %s31_s29 = sadd.s32 1, %s1188_s24 }
   0x8   : > { %p29_p0 = scmp.ge.s32.totalorder %s28_s28, 2  ;;  %s150_s30 = sadd.s32 1, %s1172_s20 }
   0x9   : > { %p160_p1 = scmp.ne.s32.totalorder %s1172_s20, %s1168_s19  ;;  %p161_p2 = scmp.eq.s32.totalorder %s892_s26, 3 }
   0xa   : > { %s1447_s28 = smov (%p29_p0, %s28_s28), 0  ;;  %s1449_s29 = smov (!%p29_p0, %s31_s29), %s1188_s24 }
   0xb   : > { %p1281_p3 = por %p161_p2, %p160_p1  ;;  %p166_p4 = scmp.ne.s32.totalorder %s1168_s19, %s1164_s18 }
   0xc   : > { %p33_p5 = scmp.ge.s32.totalorder %s1449_s29, 2  ;;  %p167_p6 = scmp.eq.s32.totalorder %s893_s27, 3 }
   0xd   : > { %p894_p7 = scmp.ge.s32.totalorder %s1192_s25, 1  ;;  %p174_p8 = scmp.lt.s32.totalorder %s1192_s25, 5 }
   0xe   : > { %s1451_s29 = smov (%p33_p5, %s1449_s29), 0  ;;  %p1291_p9 = por %p167_p6, %p166_p4 }
   0xf   : > { %p1295_p10 = pnand %p894_p7, %p174_p8  ;;  %s147_s9 = ssub.s32 %s1188_s24, %s1451_s29 }
  0x10   : > { %p148_p11 = scmp.eq.s32.totalorder %s147_s9, 0  ;;  %p1303_p13 = scmp.eq.s32.totalorder %s892_s26, 0 }
  0x11   : > { %p978_p12 = pneg %p1295_p10  ;;  %s1194_s12 = smov [#allocation3]  }
  0x12   : > { %s1308_s11 = scalar_select %p148_p11, %s1172_s20, %s150_s30  }
  0x13   : > { %s192_s13 = sshll.u32 %s1194_s12, 4  ;;  %p1312_p0 = pnand %p1303_p13, %p978_p12  ;;  %s193_s13 = int_to_ptr.vmem [resolvable:$true] %s192_s13 }
  0x14   : > { %s1081_s15 = scalar_lea.vmem %s193_s13, 8192  ;;  %p1089_p6 = scmp.lt.s32.totalorder %s193_s13, %s193_s13 }
  0x15   : > { %p1072_p1 = pneg %p1312_p0  ;;  %p1082_p2 = scmp.ne.s32.totalorder %s193_s13, %s1081_s15 }
  0x16   : > { %p1090_p7 = scmp.lt.s32.totalorder %s1081_s15, %s1081_s15 }
  0x17   : > { %p1084_p4 = pnand %p1082_p2, %p1072_p1 }
  0x18   : > { %p1091_p8 = por %p1090_p7, %p1089_p6 }
  0x19   : > { %p1085_p5 = pneg %p1084_p4 }
  0x1b   : > { %p1092_p11 = pnand %p1091_p8, %p1085_p5 }
  0x1d   : > { %1095 = shalt.err (!%p1092_p11)
}
  0x1e   : > { %s1195_s16 = smov 512   ;;  %s1196_s17 = smov 32  }
  0x1f   : > { %981 = dma.hbm_to_vmem [thread:$0]  (!%p1312_p0), %s1429_s3, 8192, %s193_s13, [#allocation4], %s1195_s16, %s1195_s16, %s1196_s17  }
  0x20   : > { %224 = sbr.rel (%p1295_p10) target bundleno = 576 (0x240), region = 40 }
  0x25   : > { %1155 = dma.done.wait (%p1303_p13), [#allocation4], 8192  }
  0x26   : > { %1157 = vsyncadd (%p1303_p13), [#allocation4], 4294959104  ;;  %s1432_s30 = sand.u32 1, %s1168_s19   ;;  %s900_s9 = sshll.u32 %s1176_s21, 4 }
  0x27   : > { %s1333_s12 = sshll.u32 %s1432_s30, 2  ;;  %p257_p12 = scmp.lt.s32.totalorder %s1180_s22, 1 }
  0x28   : > { %p259_p0 = scmp.lt.s32.totalorder %s900_s9, 31  ;;  %s255_s26 = scalar_lea.vmem [#allocation6], %s1333_s12 }
  0x29   : > { %s258_s8 = scalar_select %p257_p12, %s1180_s22, 1 }
  0x2a   : > { %s1453_s9 = smov (!%p259_p0, %s900_s9), 31  ;;  %p903_p10 = scmp.ne.s32.totalorder %s1176_s21, 0 }
  0x2b   : > { %s901_s13 = sshll.u32 %s258_s8, 5 }
  0x2c   : > { %s262_s14 = sadd.s32 %s901_s13, %s1453_s9  ;;  %270 = sbr.rel (%p903_p10) target bundleno = 51 (0x33), region = 48 }
  0x2d   : > { %s902_s15 = sshll.u32 %s262_s14, 2 }
  0x2e   : > { %s1340_s17 = scalar_lea.vmem %s1426_s0, %s902_s15 }
  0x31   : > { %v1197_v0 = vmov 0.0  }
  0x32   : > { %271 = vst [vmem:[#allocation2] sm:$0x1] %v1197_v0 }
  0x33 PF: > { %v1059_v1 = vld [vmem:[%s1427_s1 + $0x10] ss:$0 sps:$4 sm:$0x33]   ;;  %vm380_vm0 = vcmask 1041408   ;;  %v1060_v2 = vld [vmem:[%s1427_s1 + $0x8] sm:$0xff]   ;;  %vm355_vm1 = vcmask 293888  }
  0x34   : > { %970 = vmatprep.subr.msk.bf16.mxu0 %vm380_vm0, %v1059_v1  ;;  %v382_v3 = vsel %vm380_vm0, %v1059_v1, 0  ;;  %971 = vmatprep.subr.msk.bf16.mxu1 %vm380_vm0, %v1059_v1  ;;  %v1062_v4 = vld [vmem:[%s1340_s17] sm:$0xff]   ;;  %v1063_v7 = vld [vmem:[%s1340_s17 + $0x8] sm:$0xff]   ;;  %v1064_v9 = vld [vmem:[%s1340_s17 + $0x10] sm:$0xff]   ;;  %p924_p13 = scmp.ne.s32.totalorder %s1176_s21, 1 }
  0x35   : > { %943 = vmatpush3.bf16.msra.mxu0 %v382_v3  ;;  %967 = vmatpush3.bf16.msra.mxu1 %v382_v3  ;;  %v1061_v5 = vld [vmem:[%s1427_s1] sm:$0xff]   ;;  %v1067_v8 = vld [vmem:[%s1340_s17 + $0x28] sm:$0xff]   ;;  %v1068_v10 = vld [vmem:[%s1340_s17 + $0x30] sm:$0xff]  }
  0x36   : > { %944 = vmatprep.subr.bf16.mxu0 %v1060_v2  ;;  %965 = vmatprep.subr.bf16.mxu1 %v1060_v2  ;;  %v1066_v6 = vld [vmem:[%s1340_s17 + $0x20] sm:$0xff]   ;;  %v1065_v11 = vld [vmem:[%s1340_s17 + $0x18] sm:$0xff]  }
  0x37   : > { %948 = vmatprep.mubr.msk.bf16.mxu0 %vm355_vm1, %v1062_v4  ;;  %956 = vmatprep.mubr.msk.bf16.mxu1 %vm355_vm1, %v1066_v6  ;;  %v1069_v12 = vld [vmem:[%s1340_s17 + $0x38] sm:$0xff]   ;;  %v904_v17 = vld [vmem:[%s1428_s2] ss:$0 sm:$0xff] }
  0x39   : > { %945 = vmatpush3.bf16.msra.mxu0 %v1060_v2  ;;  %968 = vmatpush3.bf16.msra.mxu1 %v1060_v2 }
  0x3a   : > { %946 = vmatprep.subr.bf16.mxu0 %v1061_v5  ;;  %966 = vmatprep.subr.bf16.mxu1 %v1061_v5 }
  0x3d   : > { %947 = vmatpush3.bf16.msra.mxu0 %v1061_v5  ;;  %969 = vmatpush3.bf16.msra.mxu1 %v1061_v5 }
  0x40   : > { %949 = vmatmul.mubr.msk.bf16.vlgmr.msra.gmra.mxu0 %vm355_vm1, %v1063_v7  ;;  %957 = vmatmul.mubr.msk.bf16.vlgmr.msra.gmra.mxu1 %vm355_vm1, %v1067_v8 }
  0x41   : > { %952 = vmatprep.mubr.msk.bf16.mxu0 %vm355_vm1, %v1064_v9  ;;  %960 = vmatprep.mubr.msk.bf16.mxu1 %vm355_vm1, %v1068_v10 }
  0x48   : > { %953 = vmatmul.mubr.msk.bf16.gmra.mxu0 %vm355_vm1, %v1065_v11  ;;  %961 = vmatmul.mubr.msk.bf16.gmra.mxu1 %vm355_vm1, %v1069_v12 }
 0x100   : > { %v950_v13 = vpop.f32.mrf.mxu0  ;;  %v958_v14 = vpop.f32.mrf.mxu1 }
 0x101   : > { %v427_v22 = vadd.f32 %v950_v13, %v904_v17  ;;  %v459_v53 = vadd.f32 %v958_v14, %v904_v17 }
 0x102   : > { %v418_v15 = vpop.f32.mrf.mxu0  ;;  %v450_v16 = vpop.f32.mrf.mxu1 }
 0x103   : > { %v419_v19 = vadd.f32 %v904_v17, %v418_v15  ;;  %v483_v30 = vmax.f32 %v427_v22, 0.0  ;;  %v451_v47 = vadd.f32 %v904_v17, %v450_v16  ;;  %v491_v60 = vmax.f32 %v459_v53, 0.0 }
 0x104   : > { %v951_v18 = vpop.f32.mrf.mxu0  ;;  %v959_v21 = vpop.f32.mrf.mxu1 }
 0x105   : > { %v481_v25 = vmax.f32 %v419_v19, 0.0  ;;  %v430_v26 = vadd.f32 %v951_v18, %v904_v17  ;;  %v489_v54 = vmax.f32 %v451_v47, 0.0  ;;  %v462_v56 = vadd.f32 %v959_v21, %v904_v17  ;;  %v497_v19 = vld [vmem:[#allocation2] sm:$0x1] }
 0x106   : > { %v421_v20 = vpop.f32.mrf.mxu0  ;;  %v453_v29 = vpop.f32.mrf.mxu1 }
 0x107   : > { %v422_v23 = vadd.f32 %v904_v17, %v421_v20  ;;  %v484_v34 = vmax.f32 %v430_v26, 0.0  ;;  %v454_v51 = vadd.f32 %v904_v17, %v453_v29  ;;  %v492_v63 = vmax.f32 %v462_v56, 0.0 }
 0x108   : > { %v954_v24 = vpop.f32.mrf.mxu0  ;;  %v962_v37 = vpop.f32.mrf.mxu1 }
 0x109   : > { %v482_v27 = vmax.f32 %v422_v23, 0.0  ;;  %v443_v38 = vadd.f32 %v954_v24, %v904_v17  ;;  %v490_v57 = vmax.f32 %v454_v51, 0.0  ;;  %v475_v2 = vadd.f32 %v962_v37, %v904_v17 }
 0x10a   : > { %v434_v28 = vpop.f32.mrf.mxu0  ;;  %v466_v45 = vpop.f32.mrf.mxu1 }
 0x10b   : > { %v498_v31 = vadd.f32 %v482_v27, %v481_v25  ;;  %v435_v32 = vadd.f32 %v904_v17, %v434_v28  ;;  %v487_v46 = vmax.f32 %v443_v38, 0.0  ;;  %v467_v62 = vadd.f32 %v904_v17, %v466_v45 }
 0x10c   : > { %v955_v33 = vpop.f32.mrf.mxu0  ;;  %v963_v52 = vpop.f32.mrf.mxu1  ;;  %v495_v8 = vmax.f32 %v475_v2, 0.0 }
 0x10d   : > { %v499_v35 = vadd.f32 %v498_v31, %v483_v30  ;;  %v485_v39 = vmax.f32 %v435_v32, 0.0  ;;  %v446_v43 = vadd.f32 %v955_v33, %v904_v17  ;;  %v493_v3 = vmax.f32 %v467_v62, 0.0 }
 0x10e   : > { %v437_v36 = vpop.f32.mrf.mxu0  ;;  %v469_v59 = vpop.f32.mrf.mxu1  ;;  %v478_v6 = vadd.f32 %v963_v52, %v904_v17 }
 0x10f   : > { %v500_v40 = vadd.f32 %v499_v35, %v484_v34  ;;  %v438_v41 = vadd.f32 %v904_v17, %v437_v36  ;;  %v488_v49 = vmax.f32 %v446_v43, 0.0  ;;  %v470_v1 = vadd.f32 %v904_v17, %v469_v59 }
 0x110   : > { %v496_v10 = vmax.f32 %v478_v6, 0.0 }
 0x111   : > { %v501_v42 = vadd.f32 %v500_v40, %v485_v39  ;;  %v486_v44 = vmax.f32 %v438_v41, 0.0  ;;  %v494_v7 = vmax.f32 %v470_v1, 0.0 }
 0x113   : > { %v502_v48 = vadd.f32 %v501_v42, %v486_v44 }
 0x115   : > { %v503_v50 = vadd.f32 %v502_v48, %v487_v46 }
 0x117   : > { %v504_v55 = vadd.f32 %v503_v50, %v488_v49 }
 0x119   : > { %v505_v58 = vadd.f32 %v504_v55, %v489_v54 }
 0x11b   : > { %v506_v61 = vadd.f32 %v505_v58, %v490_v57 }
 0x11d   : > { %v507_v0 = vadd.f32 %v506_v61, %v491_v60 }
 0x11f   : > { %v508_v4 = vadd.f32 %v507_v0, %v492_v63 }
 0x121   : > { %v509_v5 = vadd.f32 %v508_v4, %v493_v3 }
 0x123   : > { %v510_v9 = vadd.f32 %v509_v5, %v494_v7 }
 0x125   : > { %v511_v11 = vadd.f32 %v510_v9, %v495_v8 }
 0x127   : > { %v512_v12 = vadd.f32 %v511_v11, %v496_v10 }
 0x129   : > { %v513_v13 = vrot.slane %v512_v12, 4 }
 0x12b   : > { %v514_v14 = vadd.f32 %v513_v13, %v512_v12 }
 0x12d   : > { %v515_v15 = vrot.slane %v514_v14, 2 }
 0x12f   : > { %v516_v16 = vadd.f32 %v515_v15, %v514_v14 }
 0x131   : > { %v517_v18 = vrot.slane %v516_v16, 1 }
 0x133   : > { %v518_v20 = vadd.f32 %v517_v18, %v516_v16  ;;  %524 = sbr.rel (%p924_p13) target bundleno = 552 (0x228), region = 52 }
 0x135   : > { %v519_v21 = vadd.f32 %v518_v20, %v497_v19 }
 0x137   : > { %520 = vst [vmem:[#allocation2] sm:$0x1] %v519_v21 }
 0x138   : > { %v588_v22 = vld [vmem:[#allocation3 + $0x1e8] sm:$0xff]  ;;  %v590_v17 = vld [vmem:[#allocation3 + $0x1f8] sm:$0xff]  ;;  %v587_v23 = vld [vmem:[#allocation3 + $0x1e0] sm:$0xff] }
 0x139   : > { %613 = vmatprep.subr.mxu0 %v588_v22  ;;  %684 = vmatprep.subr.mxu1 %v590_v17  ;;  %v589_v24 = vld [vmem:[#allocation3 + $0x1f0] sm:$0xff]  ;;  %v584_v25 = vld [vmem:[#allocation3 + $0x1c8] sm:$0xff]  ;;  %v586_v26 = vld [vmem:[#allocation3 + $0x1d8] sm:$0xff] }
 0x13a   : > { %614 = vmatpush1.msra.mxu0 %v587_v23  ;;  %685 = vmatpush1.msra.mxu1 %v589_v24  ;;  %v583_v27 = vld [vmem:[#allocation3 + $0x1c0] sm:$0xff]  ;;  %v585_v28 = vld [vmem:[#allocation3 + $0x1d0] sm:$0xff]  ;;  %v580_v29 = vld [vmem:[#allocation3 + $0x1a8] sm:$0xff]  ;;  %v1198_v23 = vmov 0.0   ;;  %v593_v24 = vlaneseq }
 0x13b   : > { %615 = vmatprep.subr.mxu0 %v584_v25  ;;  %686 = vmatprep.subr.mxu1 %v586_v26  ;;  %v582_v30 = vld [vmem:[#allocation3 + $0x1b8] sm:$0xff]  ;;  %v579_v31 = vld [vmem:[#allocation3 + $0x1a0] sm:$0xff]  ;;  %v581_v32 = vld [vmem:[#allocation3 + $0x1b0] sm:$0xff]  ;;  %v1199_v26 = vmov 1966171168  }
 0x13c   : > { %616 = vmatpush1.msra.mxu0 %v583_v27  ;;  %687 = vmatpush1.msra.mxu1 %v585_v28  ;;  %v576_v33 = vld [vmem:[#allocation3 + $0x188] sm:$0xff]  ;;  %v578_v34 = vld [vmem:[#allocation3 + $0x198] sm:$0xff]  ;;  %v575_v35 = vld [vmem:[#allocation3 + $0x180] sm:$0xff]  ;;  %v594_v25 = vshrl.u32 %v593_v24, 7  ;;  %v762_v27 = vunpack.c.l.s4 %v1199_v26  ;;  %vm786_vm2 = vcmp.lt.s32.totalorder %v593_v24, 512 }
 0x13d   : > { %617 = vmatprep.subr.mxu0 %v580_v29  ;;  %688 = vmatprep.subr.mxu1 %v582_v30  ;;  %v577_v36 = vld [vmem:[#allocation3 + $0x190] sm:$0xff]  ;;  %v572_v37 = vld [vmem:[#allocation3 + $0x168] sm:$0xff]  ;;  %v574_v38 = vld [vmem:[#allocation3 + $0x178] sm:$0xff] }
 0x13e   : > { %618 = vmatpush1.msra.mxu0 %v579_v31  ;;  %689 = vmatpush1.msra.mxu1 %v581_v32  ;;  %v571_v39 = vld [vmem:[#allocation3 + $0x160] sm:$0xff]  ;;  %v573_v40 = vld [vmem:[#allocation3 + $0x170] sm:$0xff]  ;;  %v568_v41 = vld [vmem:[#allocation3 + $0x148] sm:$0xff]  ;;  %v595_v28 = vsub.s32 0, %v594_v25  ;;  %v603_v29 = vsub.s32 2, %v594_v25  ;;  %v599_v30 = vsub.s32 1, %v594_v25 }
 0x13f   : > { %619 = vmatprep.subr.mxu0 %v576_v33  ;;  %690 = vmatprep.subr.mxu1 %v578_v34  ;;  %v570_v42 = vld [vmem:[#allocation3 + $0x158] sm:$0xff]  ;;  %v567_v43 = vld [vmem:[#allocation3 + $0x140] sm:$0xff]  ;;  %v569_v44 = vld [vmem:[#allocation3 + $0x150] sm:$0xff]  ;;  %v607_v31 = vsub.s32 3, %v594_v25  ;;  %v763_v33 = vunpack.c.0.s8 %v762_v27 }
 0x140   : > { %620 = vmatpush1.msra.mxu0 %v575_v35  ;;  %691 = vmatpush1.msra.mxu1 %v577_v36  ;;  %v564_v45 = vld [vmem:[#allocation3 + $0x128] sm:$0xff]  ;;  %v566_v46 = vld [vmem:[#allocation3 + $0x138] sm:$0xff]  ;;  %v563_v47 = vld [vmem:[#allocation3 + $0x120] sm:$0xff] }
 0x141   : > { %621 = vmatprep.subr.mxu0 %v572_v37  ;;  %692 = vmatprep.subr.mxu1 %v574_v38  ;;  %v565_v48 = vld [vmem:[#allocation3 + $0x130] sm:$0xff]  ;;  %v560_v49 = vld [vmem:[#allocation3 + $0x108] sm:$0xff]  ;;  %v562_v50 = vld [vmem:[#allocation3 + $0x118] sm:$0xff] }
 0x142   : > { %622 = vmatpush1.msra.mxu0 %v571_v39  ;;  %693 = vmatpush1.msra.mxu1 %v573_v40  ;;  %v559_v51 = vld [vmem:[#allocation3 + $0x100] sm:$0xff]  ;;  %v561_v52 = vld [vmem:[#allocation3 + $0x110] sm:$0xff]  ;;  %v556_v53 = vld [vmem:[#allocation3 + $0xe8] sm:$0xff] }
 0x143   : > { %623 = vmatprep.subr.mxu0 %v568_v41  ;;  %694 = vmatprep.subr.mxu1 %v570_v42  ;;  %v558_v54 = vld [vmem:[#allocation3 + $0xf8] sm:$0xff]  ;;  %v555_v55 = vld [vmem:[#allocation3 + $0xe0] sm:$0xff]  ;;  %v557_v56 = vld [vmem:[#allocation3 + $0xf0] sm:$0xff]  ;;  %v766_v41 = vsub.s32 %v763_v33, %v594_v25 }
 0x144   : > { %624 = vmatpush1.msra.mxu0 %v567_v43  ;;  %695 = vmatpush1.msra.mxu1 %v569_v44  ;;  %v552_v57 = vld [vmem:[#allocation3 + $0xc8] sm:$0xff]  ;;  %v554_v58 = vld [vmem:[#allocation3 + $0xd8] sm:$0xff]  ;;  %v551_v59 = vld [vmem:[#allocation3 + $0xc0] sm:$0xff] }
 0x145   : > { %625 = vmatprep.subr.mxu0 %v564_v45  ;;  %696 = vmatprep.subr.mxu1 %v566_v46  ;;  %v553_v60 = vld [vmem:[#allocation3 + $0xd0] sm:$0xff]  ;;  %v548_v61 = vld [vmem:[#allocation3 + $0xa8] sm:$0xff]  ;;  %v550_v62 = vld [vmem:[#allocation3 + $0xb8] sm:$0xff] }
 0x146   : > { %626 = vmatpush1.msra.mxu0 %v563_v47  ;;  %697 = vmatpush1.msra.mxu1 %v565_v48  ;;  %v547_v63 = vld [vmem:[#allocation3 + $0xa0] sm:$0xff]  ;;  %v549_v0 = vld [vmem:[#allocation3 + $0xb0] sm:$0xff]  ;;  %v544_v1 = vld [vmem:[#allocation3 + $0x88] sm:$0xff] }
 0x147   : > { %627 = vmatprep.subr.mxu0 %v560_v49  ;;  %698 = vmatprep.subr.mxu1 %v562_v50  ;;  %v546_v2 = vld [vmem:[#allocation3 + $0x98] sm:$0xff]  ;;  %v543_v3 = vld [vmem:[#allocation3 + $0x80] sm:$0xff]  ;;  %v545_v4 = vld [vmem:[#allocation3 + $0x90] sm:$0xff] }
 0x148   : > { %628 = vmatpush1.msra.mxu0 %v559_v51  ;;  %699 = vmatpush1.msra.mxu1 %v561_v52  ;;  %v540_v5 = vld [vmem:[#allocation3 + $0x68] sm:$0xff]  ;;  %v542_v6 = vld [vmem:[#allocation3 + $0x78] sm:$0xff]  ;;  %v539_v7 = vld [vmem:[#allocation3 + $0x60] sm:$0xff] }
 0x149   : > { %629 = vmatprep.subr.mxu0 %v556_v53  ;;  %700 = vmatprep.subr.mxu1 %v558_v54  ;;  %v541_v8 = vld [vmem:[#allocation3 + $0x70] sm:$0xff]  ;;  %v536_v9 = vld [vmem:[#allocation3 + $0x48] sm:$0xff]  ;;  %v538_v10 = vld [vmem:[#allocation3 + $0x58] sm:$0xff] }
 0x14a   : > { %630 = vmatpush1.msra.mxu0 %v555_v55  ;;  %701 = vmatpush1.msra.mxu1 %v557_v56  ;;  %v535_v11 = vld [vmem:[#allocation3 + $0x40] sm:$0xff]  ;;  %v537_v12 = vld [vmem:[#allocation3 + $0x50] sm:$0xff]  ;;  %v532_v13 = vld [vmem:[#allocation3 + $0x28] sm:$0xff] }
 0x14b   : > { %631 = vmatprep.subr.mxu0 %v552_v57  ;;  %702 = vmatprep.subr.mxu1 %v554_v58  ;;  %v534_v14 = vld [vmem:[#allocation3 + $0x38] sm:$0xff]  ;;  %v531_v15 = vld [vmem:[#allocation3 + $0x20] sm:$0xff]  ;;  %v533_v16 = vld [vmem:[#allocation3 + $0x30] sm:$0xff] }
 0x14c   : > { %632 = vmatpush1.msra.mxu0 %v551_v59  ;;  %703 = vmatpush1.msra.mxu1 %v553_v60  ;;  %v525_v18 = vld [vmem:[#allocation2] sm:$0x1]  ;;  %v528_v19 = vld [vmem:[#allocation3 + $0x8] sm:$0xff]  ;;  %v527_v21 = vld [vmem:[#allocation3] sm:$0xff] }
 0x14d   : > { %633 = vmatprep.subr.mxu0 %v548_v61  ;;  %704 = vmatprep.subr.mxu1 %v550_v62  ;;  %v530_v20 = vld [vmem:[#allocation3 + $0x18] sm:$0xff]  ;;  %v529_v22 = vld [vmem:[#allocation3 + $0x10] sm:$0xff]  ;;  %v526_v17 = vmul.f32 0.00390625, %v525_v18 }
 0x14e   : > { %634 = vmatpush1.msra.mxu0 %v547_v63  ;;  %705 = vmatpush1.msra.mxu1 %v549_v0  ;;  %v591_v32 = vld [vmem:[%s1430_s4] sm:$0xf] }
 0x14f   : > { %635 = vmatprep.subr.mxu0 %v544_v1  ;;  %706 = vmatprep.subr.mxu1 %v546_v2  ;;  %v596_v34 = vrot.slane %v591_v32, %v595_v28  ;;  %v604_v35 = vrot.slane %v591_v32, %v603_v29  ;;  %v600_v36 = vrot.slane %v591_v32, %v599_v30 }
 0x150   : > { %636 = vmatpush1.msra.mxu0 %v543_v3  ;;  %707 = vmatpush1.msra.mxu1 %v545_v4  ;;  %v608_v37 = vrot.slane %v591_v32, %v607_v31 }
 0x151   : > { %637 = vmatprep.subr.mxu0 %v540_v5  ;;  %708 = vmatprep.subr.mxu1 %v542_v6 }
 0x152   : > { %638 = vmatpush1.msra.mxu0 %v539_v7  ;;  %709 = vmatpush1.msra.mxu1 %v541_v8 }
 0x153   : > { %639 = vmatprep.subr.mxu0 %v536_v9  ;;  %710 = vmatprep.subr.mxu1 %v538_v10 }
 0x154   : > { %640 = vmatpush1.msra.mxu0 %v535_v11  ;;  %711 = vmatpush1.msra.mxu1 %v537_v12 }
 0x155   : > { %641 = vmatprep.subr.mxu0 %v532_v13  ;;  %712 = vmatprep.subr.mxu1 %v534_v14 }
 0x156   : > { %642 = vmatpush1.msra.mxu0 %v531_v15  ;;  %713 = vmatpush1.msra.mxu1 %v533_v16 }
 0x157   : > { %643 = vmatprep.subr.mxu0 %v528_v19  ;;  %714 = vmatprep.subr.mxu1 %v530_v20 }
 0x158   : > { %644 = vmatpush1.msra.mxu0 %v527_v21  ;;  %677 = vmatprep.mubr.f32.mxu0 %v1198_v23 }
 0x159   : > { %715 = vmatpush1.msra.mxu1 %v529_v22  ;;  %748 = vmatprep.mubr.f32.mxu1 %v1198_v23 }
 0x15a   : > { %678 = vmatmul.mubr.f32.vlgmr.msra.gmra.mxu0 %v526_v17  ;;  %749 = vmatmul.mubr.f32.vlgmr.msra.gmra.mxu1 %v526_v17 }
 0x21a   : > { %v679_v38 = vpop.f32.mrf.mxu0  ;;  %v750_v39 = vpop.f32.mrf.mxu1 }
 0x21b   : > { %v680_v43 = vadd.f32 %v679_v38, %v596_v34  ;;  %v751_v44 = vadd.f32 %v750_v39, %v604_v35 }
 0x21c   : > { %v681_v40 = vpop.f32.mrf.mxu0  ;;  %v752_v42 = vpop.f32.mrf.mxu1 }
 0x21d   : > { %v682_v45 = vadd.f32 %v681_v40, %v600_v36  ;;  %v753_v46 = vadd.f32 %v752_v42, %v608_v37 }
 0x21f   : > { %v759_v47 = vcombine.low %v680_v43, %v682_v45  ;;  %v760_v48 = vcombine.low %v751_v44, %v753_v46 }
 0x221   : > { %v767_v49 = vrot.slane %v759_v47, %v766_v41  ;;  %v774_v50 = vrot.slane %v760_v48, %v766_v41 }
 0x223   : > { %v775_v51 = vcombine.low %v767_v49, %v774_v50 }
 0x225   : > { %v782_v52 = vrot.slane %v775_v51, %v766_v41 }
 0x227   : > { %788 = vst.msk [vmem:[%s255_s26] sm:$0xf] %vm786_vm2, %v782_v52 }
 0x228 PF: > { %s930_s16 = sshll.u32 %s1180_s22, 6  ;;  %s804_s8 = sshll.u32 %s255_s26, 4  ;;  %s805_s8 = int_to_ptr.vmem [resolvable:$true] %s804_s8 }
 0x229   : > { %s802_s9 = scalar_lea.hbm %s1431_s5, %s930_s16  ;;  %s1438_s30 = sand.u32 1, %s1168_s19  }
 0x22a   : > { %s790_s13 = scalar_lea.sflag [#allocation5], %s1438_s30  ;;  %s1096_s14 = scalar_lea.vmem %s805_s8, 64 }
 0x22b   : > { %p1097_p1 = scmp.ne.s32.totalorder %s805_s8, %s1096_s14  ;;  %s1200_s15 = smov [#allocation6]  }
 0x22c   : > { %s1100_s21 = sshll.u32 %s1200_s15, 4  ;;  %s1101_s21 = int_to_ptr.vmem [resolvable:$false] %s1100_s21 }
 0x22d   : > { %p1098_p2 = pnand %p1097_p1, %p1281_p3  ;;  %s1102_s10 = scalar_lea.vmem %s1101_s21, 128 }
 0x22e   : > { %p1103_p5 = scmp.lt.s32.totalorder %s805_s8, %s1101_s21  ;;  %p1104_p6 = scmp.lt.s32.totalorder %s1102_s10, %s1096_s14 }
 0x22f   : > { %p1099_p4 = pneg %p1098_p2 }
 0x230   : > { %p1105_p7 = por %p1104_p6, %p1103_p5 }
 0x232   : > { %p1106_p8 = pnand %p1105_p7, %p1099_p4 }
 0x234   : > { %1109 = shalt.err (!%p1106_p8)
}
 0x235   : > { %s1110_s22 = scalar_lea.hbm %s802_s9, 64  ;;  %s1114_s16 = scalar_lea.hbm %s1431_s5, 128 }
 0x236   : > { %p1111_p11 = scmp.ne.s32.totalorder %s802_s9, %s1110_s22  ;;  %p1115_p10 = scmp.lt.s32.totalorder %s802_s9, %s1431_s5 }
 0x237   : > { %p1116_p13 = scmp.lt.s32.totalorder %s1114_s16, %s1110_s22 }
 0x238   : > { %p1112_p12 = pnand %p1111_p11, %p1281_p3 }
 0x239   : > { %p1117_p1 = por %p1116_p13, %p1115_p10 }
 0x23a   : > { %p1113_p0 = pneg %p1112_p12 }
 0x23c   : > { %p1118_p2 = pnand %p1117_p1, %p1113_p0 }
 0x23e   : > { %1121 = shalt.err (!%p1118_p2)
}
 0x23f   : > { %976 = dma.vmem_to_hbm [thread:$0]  (%p1281_p3), %s805_s8, 64, %s802_s9, %s790_s13  }
 0x240 PF: > { %p988_p4 = scmp.ge.s32.totalorder %s1192_s25, 2  ;;  %s816_s30 = sand.u32 1, %s1164_s18  }
 0x241   : > { %s817_s14 = scalar_lea.sflag [#allocation5], %s816_s30 }
 0x242   : > { %p983_p5 = pnand %p988_p4, %p1291_p9 }
 0x244   : > { %p984_p6 = pneg %p983_p5 }
 0x246   : > { %1159 = dma.done.wait (%p984_p6), %s817_s14, 64  }
 0x247   : > { %1161 = vsyncadd (%p984_p6), %s817_s14, 4294967232  ;;  %s19_s25 = sadd.s32 1, %s1192_s25   ;;  %s1439_s18 = smov %s1168_s19 }
 0x248   : > { %p16_p7 = scmp.ge.s32.totalorder %s19_s25, 6   ;;  %s1440_s19 = smov %s1172_s20 }
 0x249   : > { %s1441_s20 = smov %s1308_s11  ;;  %s1442_s21 = smov %s1184_s23 }
 0x24a   : > { %s1443_s22 = smov %s1188_s24  ;;  %s1444_s23 = smov %s1447_s28 }
 0x24b   : > { %s1445_s24 = smov %s1451_s29  ;;  %18 = sbr.rel (!%p16_p7) target bundleno = 6 (0x6), region = 88 }
 0x250   :  { %822 = vsyncpa [#allocation4], 1 }
 0x251   :  { %824 = vsyncpa [#allocation4 + $0x1], 1 }
 0x252   :  { %825 = vsyncpa [#allocation5], 1 }
 0x253   :  { %827 = vsyncpa [#allocation5 + $0x1], 1 }

</bundles_post_ra>
